<compile_context>
chip_gen: v7x
topology: tpu7x:2x2x1
jax: 0.10.0
libtpu: 0.0.40
codegen_flags: <defaults>
</compile_context>

<pallas_src>
from functools import partial

import jax
import jax.numpy as jnp
from jax.experimental import pallas as pl
from jax.experimental.pallas import tpu as pltpu


LEAKY_SLOPE = 0.01   # nn.LeakyReLU default negative_slope
_LANE = 128
_SUBLANE = 8
_PAD_BIAS = -1e30    # phantom-class bias so the padded slab is directly usable


def _leaky_relu(x):
    # slope < 1  =>  max(x, slope*x) == LeakyReLU(x); cheaper than where().
    return jnp.maximum(x, LEAKY_SLOPE * x)


def _round_up(x, m):
    return ((x + m - 1) // m) * m


def _cdiv(a, b):
    return -(-a // b)


def _classifier_kernel(x_ref, w1_ref, b1_ref, w2_ref, b2_ref,
                       w3_ref, b3_ref, out_ref):
    # x: (TM, H) f32 -> bf16 for the MXU; accumulate f32; VPU math stays f32.
    x = x_ref[...].astype(jnp.bfloat16)

    h1 = jnp.dot(x, w1_ref[...], preferred_element_type=jnp.float32)
    h1 = _leaky_relu(h1 + b1_ref[...])                       # (TM, 256) f32

    h2 = jnp.dot(h1.astype(jnp.bfloat16), w2_ref[...],
                 preferred_element_type=jnp.float32)
    h2 = _leaky_relu(h2 + b2_ref[...])                       # (TM, 128) f32

    h3 = jnp.dot(h2.astype(jnp.bfloat16), w3_ref[...],
                 preferred_element_type=jnp.float32)
    out_ref[...] = (h3 + b3_ref[...]).astype(out_ref.dtype)  # (TM, CP) lane-dense


def prepare_params(params, num_classes):
    """One-time weight prep (OUTSIDE jit / per-call path): cast weights to
    bf16, keep biases f32, and pad layer-3 to a lane-dense 128-wide slab with
    a large-negative bias on phantom classes."""
    C = num_classes
    CP = _round_up(C, _LANE)
    w3 = params["w3"]
    b3 = params["b3"]
    if CP != C:
        w3 = jnp.pad(w3, ((0, 0), (0, CP - C)))
        b3 = jnp.pad(b3, ((0, 0), (0, CP - C)), constant_values=_PAD_BIAS)
    prepared = {
        "w1": params["w1"].astype(jnp.bfloat16),
        "b1": params["b1"].astype(jnp.float32),
        "w2": params["w2"].astype(jnp.bfloat16),
        "b2": params["b2"].astype(jnp.float32),
        "w3": w3.astype(jnp.bfloat16),
        "b3": b3.astype(jnp.float32),
    }
    return jax.tree_util.tree_map(jax.device_put, prepared)


@partial(jax.jit, static_argnames=("num_classes", "return_padded"))
def dialog_act_classification_we(word_outputs, prepared, num_classes,
                                 return_padded=False):
    """word_outputs: (B, max_len, H) float32 encoder output.
    prepared: output of prepare_params (bf16 weights, padded layer 3).
    Returns logits (B, num_classes) f32, or the lane-dense (B, CP) slab if
    return_padded=True (phantom classes carry ~-1e30, safe for argmax)."""
    B, L, H = word_outputs.shape

    w1, b1 = prepared["w1"], prepared["b1"]
    w2, b2 = prepared["w2"], prepared["b2"]
    w3, b3 = prepared["w3"], prepared["b3"]
    CP = w3.shape[1]

    # Batch tiling (HBM-/overhead-bound kernel): big tiles to amortize the
    # ~0.35 µs/step overhead; >=2 grid steps when B is large enough so both
    # v7x TensorCores get work via the "parallel" batch axis.
    if B <= 2 * _SUBLANE:
        TM = _round_up(B, _SUBLANE)
    else:
        TM = min(1024, _round_up(_cdiv(B, 2), _SUBLANE))
    grid = (_cdiv(B, TM),)

    # Fuse CLS (token 0) extraction into the BlockSpec: view (B, L, H) as
    # (B, L*H) (free for a contiguous array) and read only the first H lanes
    # of every row.  Requires H % 128 == 0 (true for BERT's 768).
    if H % _LANE == 0:
        x_in = word_outputs.reshape(B, L * H)
    else:
        # Fallback for non-lane-aligned hidden sizes: materialize the slice.
        x_in = word_outputs[:, 0, :]
    x_spec = pl.BlockSpec((TM, H), lambda i: (i, 0))

    const2 = lambda shape: pl.BlockSpec(shape, lambda i: (0, 0))  # resident

    flops = 2 * B * (H * 256 + 256 * 128 + 128 * CP)
    bytes_accessed = (B * H * 4                                   # CLS rows
                      + (H * 256 + 256 * 128 + 128 * CP) * 2      # bf16 weights
                      + (256 + 128 + CP) * 4                      # f32 biases
                      + B * CP * 4)                               # logits out

    logits_padded = pl.pallas_call(
        _classifier_kernel,
        out_shape=jax.ShapeDtypeStruct((B, CP), jnp.float32),
        grid=grid,
        in_specs=[
            x_spec,
            const2(w1.shape), const2(b1.shape),
            const2(w2.shape), const2(b2.shape),
            const2(w3.shape), const2(b3.shape),
        ],
        out_specs=pl.BlockSpec((TM, CP), lambda i: (i, 0)),
        compiler_params=pltpu.CompilerParams(
            dimension_semantics=("parallel",)),
        cost_estimate=pl.CostEstimate(
            flops=flops, transcendentals=0, bytes_accessed=bytes_accessed),
    )(x_in, w1, b1, w2, b2, w3, b3)

    if return_padded:
        return logits_padded
    return logits_padded[:, :num_classes]


def init_params(key, hidden_size, num_classes):
    """Deterministic init mimicking nn.Linear (uniform(-1/sqrt(fan_in), +))."""
    dims = [(hidden_size, 256), (256, 128), (128, num_classes)]
    params = {}
    keys = jax.random.split(key, 2 * len(dims))
    for i, (fan_in, fan_out) in enumerate(dims):
        bound = 1.0 / jnp.sqrt(fan_in)
        # stored as (in, out) = transpose of PyTorch's (out, in) weight
        params[f"w{i+1}"] = jax.random.uniform(
            keys[2 * i], (fan_in, fan_out), jnp.float32, -bound, bound)
        params[f"b{i+1}"] = jax.random.uniform(
            keys[2 * i + 1], (1, fan_out), jnp.float32, -bound, bound)
    return params


if __name__ == "__main__":
    # Small shapes consistent with the module (B, max_len, hidden) -> logits.
    B, MAX_LEN, HIDDEN, NUM_CLASSES = 8, 8, 128, 18

    key = jax.random.PRNGKey(0)
    k_emb, k_params = jax.random.split(key)

    # Synthetic encoder output (stands in for UtteranceWordEmbeddings/BERT).
    word_outputs = jax.random.normal(k_emb, (B, MAX_LEN, HIDDEN), jnp.float32)
    params = init_params(k_params, HIDDEN, NUM_CLASSES)

    # One-time weight prep (outside the per-call jitted path).
    prepared = prepare_params(params, NUM_CLASSES)

    logits = dialog_act_classification_we(word_outputs, prepared, NUM_CLASSES)
    jax.block_until_ready(logits)
    assert logits.shape == (B, NUM_CLASSES)

    # Reference in plain JAX, mirroring the kernel's bf16 matmul / f32 math.
    # NOTE: bf16 weights/activations (f32 accumulate) give ~0.3-1% relative
    # error vs a pure-f32 PyTorch forward; acceptable for a classifier head.
    feat = word_outputs[:, 0, :]
    w1b = params["w1"].astype(jnp.bfloat16)
    w2b = params["w2"].astype(jnp.bfloat16)
    w3b = params["w3"].astype(jnp.bfloat16)
    h = jnp.dot(feat.astype(jnp.bfloat16), w1b,
                preferred_element_type=jnp.float32)
    h = _leaky_relu(h + params["b1"])
    h = jnp.dot(h.astype(jnp.bfloat16), w2b,
                preferred_element_type=jnp.float32)
    h = _leaky_relu(h + params["b2"])
    h = jnp.dot(h.astype(jnp.bfloat16), w3b,
                preferred_element_type=jnp.float32)
    ref = h + params["b3"]

    assert jnp.allclose(logits, ref, atol=2e-3, rtol=2e-3), (
        "max abs err = %f" % float(jnp.max(jnp.abs(logits - ref))))

    # Padded-slab path: phantom classes carry ~-1e30, so argmax over the
    # lane-dense slab matches argmax over the sliced logits.
    slab = dialog_act_classification_we(word_outputs, prepared, NUM_CLASSES,
                                        return_padded=True)
    jax.block_until_ready(slab)
    assert slab.shape == (B, 128)
    assert jnp.array_equal(jnp.argmax(slab, axis=-1),
                           jnp.argmax(logits, axis=-1))

    print("KERNEL_OK")
</pallas_src>

<mosaic_0001>
module attributes {stable_mosaic.version = 11 : i64} {
  func.func @_classifier_kernel(%arg0: i32, %arg1: memref<8x128xf32, #tpu.memory_space<vmem>>, %arg2: memref<128x256xbf16, #tpu.memory_space<vmem>>, %arg3: memref<1x256xf32, #tpu.memory_space<vmem>>, %arg4: memref<256x128xbf16, #tpu.memory_space<vmem>>, %arg5: memref<1x128xf32, #tpu.memory_space<vmem>>, %arg6: memref<128x128xbf16, #tpu.memory_space<vmem>>, %arg7: memref<1x128xf32, #tpu.memory_space<vmem>>, %arg8: memref<8x128xf32, #tpu.memory_space<vmem>>) attributes {dimension_semantics = [#tpu.dimension_semantics<parallel>], iteration_bounds = array<i64: 1>, scalar_prefetch = 0 : i64, scratch_operands = 0 : i64, tpu.core_type = #tpu.core_type<tc>, window_params = [{transform_indices = @transform_0, window_bounds = array<i64: 8, 128>}, {pipeline_mode = #tpu.pipeline_mode<synchronous>, transform_indices = @transform_1, window_bounds = array<i64: 128, 256>}, {pipeline_mode = #tpu.pipeline_mode<synchronous>, transform_indices = @transform_2, window_bounds = array<i64: 1, 256>}, {pipeline_mode = #tpu.pipeline_mode<synchronous>, transform_indices = @transform_3, window_bounds = array<i64: 256, 128>}, {pipeline_mode = #tpu.pipeline_mode<synchronous>, transform_indices = @transform_4, window_bounds = array<i64: 1, 128>}, {pipeline_mode = #tpu.pipeline_mode<synchronous>, transform_indices = @transform_5, window_bounds = array<i64: 128, 128>}, {pipeline_mode = #tpu.pipeline_mode<synchronous>, transform_indices = @transform_6, window_bounds = array<i64: 1, 128>}, {transform_indices = @transform_7, window_bounds = array<i64: 8, 128>}]} {
    %c0 = arith.constant 0 : index
    %c0_0 = arith.constant 0 : index
    %0 = vector.load %arg1[%c0, %c0_0] : memref<8x128xf32, #tpu.memory_space<vmem>>, vector<8x128xf32>
    %1 = arith.truncf %0 : vector<8x128xf32> to vector<8x128xbf16>
    %c0_1 = arith.constant 0 : index
    %c0_2 = arith.constant 0 : index
    %2 = vector.load %arg2[%c0_1, %c0_2] : memref<128x256xbf16, #tpu.memory_space<vmem>>, vector<128x256xbf16>
    %cst = arith.constant dense<0.000000e+00> : vector<8x256xf32>
    %3 = tpu.matmul %1, %2, %cst {dimension_numbers = #tpu.dot_dimension_numbers<[1], [0], [0], [1], [0, 0, 1, 1], [], []>} : vector<8x128xbf16>, vector<128x256xbf16>, vector<8x256xf32> -> vector<8x256xf32>
    %c0_3 = arith.constant 0 : index
    %c0_4 = arith.constant 0 : index
    %4 = vector.load %arg3[%c0_3, %c0_4] : memref<1x256xf32, #tpu.memory_space<vmem>>, vector<1x256xf32>
    %5 = vector.broadcast %4 : vector<1x256xf32> to vector<8x256xf32>
    %6 = arith.addf %3, %5 : vector<8x256xf32>
    %cst_5 = arith.constant 0.00999999977 : f32
    %7 = vector.broadcast %cst_5 : f32 to vector<8x256xf32>
    %8 = arith.mulf %7, %6 : vector<8x256xf32>
    %9 = arith.maximumf %6, %8 : vector<8x256xf32>
    %10 = arith.truncf %9 : vector<8x256xf32> to vector<8x256xbf16>
    %c0_6 = arith.constant 0 : index
    %c0_7 = arith.constant 0 : index
    %11 = vector.load %arg4[%c0_6, %c0_7] : memref<256x128xbf16, #tpu.memory_space<vmem>>, vector<256x128xbf16>
    %cst_8 = arith.constant dense<0.000000e+00> : vector<8x128xf32>
    %12 = tpu.matmul %10, %11, %cst_8 {dimension_numbers = #tpu.dot_dimension_numbers<[1], [0], [0], [1], [0, 0, 1, 1], [], []>} : vector<8x256xbf16>, vector<256x128xbf16>, vector<8x128xf32> -> vector<8x128xf32>
    %c0_9 = arith.constant 0 : index
    %c0_10 = arith.constant 0 : index
    %13 = vector.load %arg5[%c0_9, %c0_10] : memref<1x128xf32, #tpu.memory_space<vmem>>, vector<1x128xf32>
    %14 = vector.broadcast %13 : vector<1x128xf32> to vector<8x128xf32>
    %15 = arith.addf %12, %14 : vector<8x128xf32>
    %cst_11 = arith.constant 0.00999999977 : f32
    %16 = vector.broadcast %cst_11 : f32 to vector<8x128xf32>
    %17 = arith.mulf %16, %15 : vector<8x128xf32>
    %18 = arith.maximumf %15, %17 : vector<8x128xf32>
    %19 = arith.truncf %18 : vector<8x128xf32> to vector<8x128xbf16>
    %c0_12 = arith.constant 0 : index
    %c0_13 = arith.constant 0 : index
    %20 = vector.load %arg6[%c0_12, %c0_13] : memref<128x128xbf16, #tpu.memory_space<vmem>>, vector<128x128xbf16>
    %cst_14 = arith.constant dense<0.000000e+00> : vector<8x128xf32>
    %21 = tpu.matmul %19, %20, %cst_14 {dimension_numbers = #tpu.dot_dimension_numbers<[1], [0], [0], [1], [0, 0, 1, 1], [], []>} : vector<8x128xbf16>, vector<128x128xbf16>, vector<8x128xf32> -> vector<8x128xf32>
    %c0_15 = arith.constant 0 : index
    %c0_16 = arith.constant 0 : index
    %22 = vector.load %arg7[%c0_15, %c0_16] : memref<1x128xf32, #tpu.memory_space<vmem>>, vector<1x128xf32>
    %23 = vector.broadcast %22 : vector<1x128xf32> to vector<8x128xf32>
    %24 = arith.addf %21, %23 : vector<8x128xf32>
    %c0_17 = arith.constant 0 : index
    %c0_18 = arith.constant 0 : index
    %25 = vector.load %arg8[%c0_17, %c0_18] : memref<8x128xf32, #tpu.memory_space<vmem>>, vector<8x128xf32>
    tpu.vector_store %arg8[%c0_17, %c0_18], %24 {strides = array<i32>} : memref<8x128xf32, #tpu.memory_space<vmem>>, vector<8x128xf32>,
    return
  }
  func.func @transform_0(%arg0: i32) -> (i32, i32) {
    %c0_i32 = arith.constant 0 : i32
    %c0_i32_0 = arith.constant 0 : i32
    return %arg0, %c0_i32 : i32, i32
  }
  func.func @transform_1(%arg0: i32) -> (i32, i32) {
    %c0_i32 = arith.constant 0 : i32
    %c0_i32_0 = arith.constant 0 : i32
    %c0_i32_1 = arith.constant 0 : i32
    return %c0_i32, %c0_i32_0 : i32, i32
  }
  func.func @transform_2(%arg0: i32) -> (i32, i32) {
    %c0_i32 = arith.constant 0 : i32
    %c0_i32_0 = arith.constant 0 : i32
    %c0_i32_1 = arith.constant 0 : i32
    return %c0_i32, %c0_i32_0 : i32, i32
  }
  func.func @transform_3(%arg0: i32) -> (i32, i32) {
    %c0_i32 = arith.constant 0 : i32
    %c0_i32_0 = arith.constant 0 : i32
    %c0_i32_1 = arith.constant 0 : i32
    return %c0_i32, %c0_i32_0 : i32, i32
  }
  func.func @transform_4(%arg0: i32) -> (i32, i32) {
    %c0_i32 = arith.constant 0 : i32
    %c0_i32_0 = arith.constant 0 : i32
    %c0_i32_1 = arith.constant 0 : i32
    return %c0_i32, %c0_i32_0 : i32, i32
  }
  func.func @transform_5(%arg0: i32) -> (i32, i32) {
    %c0_i32 = arith.constant 0 : i32
    %c0_i32_0 = arith.constant 0 : i32
    %c0_i32_1 = arith.constant 0 : i32
    return %c0_i32, %c0_i32_0 : i32, i32
  }
  func.func @transform_6(%arg0: i32) -> (i32, i32) {
    %c0_i32 = arith.constant 0 : i32
    %c0_i32_0 = arith.constant 0 : i32
    %c0_i32_1 = arith.constant 0 : i32
    return %c0_i32, %c0_i32_0 : i32, i32
  }
  func.func @transform_7(%arg0: i32) -> (i32, i32) {
    %c0_i32 = arith.constant 0 : i32
    %c0_i32_0 = arith.constant 0 : i32
    return %arg0, %c0_i32 : i32, i32
  }
}

</mosaic_0001>

<bundles_post_ra>
// kernel: dialog_act_classification_we.1
= control target key start
LH: loop header
LB: loop body
LE: loop exit
PB: predicated region body
PF: predicated region fallthrough
CT: control target
= control target key end

     0   :  { %12 = vsyncpa [#allocation3], 0  ;;  %s884_s0 = inlined_call_operand.vmem [shape: f32[8,1024], index: 0, kind: input, shape index: {}]   ;;  %s885_s1 = inlined_call_operand.vmem [shape: bf16[128,256], index: 1, kind: input, shape index: {}]   ;;  %s886_s2 = inlined_call_operand.vmem [shape: f32[1,256], index: 2, kind: input, shape index: {}]   ;;  %s887_s3 = inlined_call_operand.hbm [shape: bf16[256,128], index: 3, kind: input, shape index: {}]   ;;  %s888_s4 = inlined_call_operand.vmem [shape: f32[1,128], index: 4, kind: input, shape index: {}]   ;;  %s889_s5 = inlined_call_operand.hbm [shape: bf16[128,128], index: 5, kind: input, shape index: {}]   ;;  %s890_s6 = inlined_call_operand.vmem [shape: f32[1,128], index: 6, kind: input, shape index: {}]   ;;  %s891_s7 = inlined_call_operand.hbm [shape: f32[8,128], index: 7, kind: output, shape index: {}]  }
   0x1   :  { %13 = vsyncpa [#allocation6], 0 }
   0x2   :  { %14 = vsyncpa [#allocation4], 0  ;;  %s740_s24 = smov [#allocation2]   ;;  %s668_s28 = scalar_lea.hbm %s887_s3, 2048 }
   0x3   :  { %s26_s25 = sshll.u32 %s740_s24, 4  ;;  %p669_p0 = scmp.ne.s32.totalorder %s887_s3, %s668_s28  ;;  %s27_s25 = int_to_ptr.vmem [resolvable:$true] %s26_s25 }
   0x4   :  { %p672_p1 = scmp.lt.u32.totalorder %s668_s28, %s887_s3 }
   0x6   :  { %p674_p2 = pnand %p672_p1, %p669_p0 }
   0x8   :  { %677 = shalt.err (!%p674_p2)
}
   0x9   :  { %s678_s10 = scalar_lea.vmem %s27_s25, 2048  ;;  %p683_p4 = scmp.lt.s32.totalorder %s27_s25, %s27_s25 }
   0xa   :  { %p679_p3 = scmp.ne.s32.totalorder %s27_s25, %s678_s10  ;;  %p684_p5 = scmp.lt.s32.totalorder %s678_s10, %s678_s10 }
   0xc   :  { %p685_p6 = por %p684_p5, %p683_p4 }
   0xe   :  { %p686_p7 = pnand %p685_p6, %p679_p3 }
  0x10   :  { %689 = shalt.err (!%p686_p7)
}
  0x11   :  { %s741_s11 = smov 64   ;;  %s742_s12 = smov 4  }
  0x12   :  { %32 = dma.hbm_to_vmem [thread:$0]  %s887_s3, 2048, %s27_s25, [#allocation3], %s741_s11, %s741_s11, %s742_s12  }
  0x13   :  { %s743_s15 = smov [#allocation5]   ;;  %s690_s19 = scalar_lea.hbm %s889_s5, 1024 }
  0x14   :  { %s40_s16 = sshll.u32 %s743_s15, 4  ;;  %p691_p8 = scmp.ne.s32.totalorder %s889_s5, %s690_s19  ;;  %s41_s16 = int_to_ptr.vmem [resolvable:$true] %s40_s16 }
  0x15   :  { %p694_p9 = scmp.lt.u32.totalorder %s690_s19, %s889_s5 }
  0x17   :  { %p696_p10 = pnand %p694_p9, %p691_p8 }
  0x19   :  { %699 = shalt.err (!%p696_p10)
}
  0x1a   :  { %s700_s24 = scalar_lea.vmem %s41_s16, 1024  ;;  %p705_p12 = scmp.lt.s32.totalorder %s41_s16, %s41_s16 }
  0x1b   :  { %p701_p11 = scmp.ne.s32.totalorder %s41_s16, %s700_s24  ;;  %p706_p13 = scmp.lt.s32.totalorder %s700_s24, %s700_s24 }
  0x1d   :  { %p707_p0 = por %p706_p13, %p705_p12 }
  0x1f   :  { %p708_p1 = pnand %p707_p0, %p701_p11 }
  0x21   :  { %711 = shalt.err (!%p708_p1)
}
  0x22   :  { %46 = dma.hbm_to_vmem [thread:$0]  %s889_s5, 1024, %s41_s16, [#allocation6], %s741_s11, %s741_s11, %s742_s12  }
  0x23   :  { %734 = dma.done.wait [#allocation3], 2048  }
  0x24   :  { %735 = vsyncadd [#allocation3], 4294965248 }
  0x25   :  { %736 = dma.done.wait [#allocation6], 1024  }
  0x26   :  { %737 = vsyncadd [#allocation6], 4294966272  ;;  %v744_v0 = vmov 0   ;;  %v620_v1 = vld [vmem:[%s885_s1 + $0x4] ss:$8 sps:$4 sm:$0xff]   ;;  %v648_v15 = vld [vmem:[#allocation2 + $0x50] sm:$0xff]   ;;  %v76_v41 = vlaneseq }
  0x27   :  { %198 = vmatprep.mubr.bf16.mxu0 %v744_v0  ;;  %v622_v2 = vld [vmem:[%s885_s1] ss:$8 sps:$4 sm:$0xff]   ;;  %166 = vmatprep.subr.bf16.mxu0 %v620_v1  ;;  %v623_v3 = vld [vmem:[%s885_s1 + $0x14] ss:$8 sps:$4 sm:$0xff]   ;;  %v625_v4 = vld [vmem:[%s885_s1 + $0x10] ss:$8 sps:$4 sm:$0xff]  }
  0x28   :  { %167 = vmatpush1.bf16.msra.mxu0 %v622_v2  ;;  %v626_v5 = vld [vmem:[%s885_s1 + $0x24] ss:$8 sps:$4 sm:$0xff]   ;;  %v628_v6 = vld [vmem:[%s885_s1 + $0x20] ss:$8 sps:$4 sm:$0xff]   ;;  %v629_v7 = vld [vmem:[%s885_s1 + $0x34] ss:$8 sps:$4 sm:$0xff]  }
  0x29   :  { %168 = vmatprep.subr.bf16.mxu0 %v623_v3  ;;  %v631_v8 = vld [vmem:[%s885_s1 + $0x30] ss:$8 sps:$4 sm:$0xff]   ;;  %v632_v9 = vld [vmem:[%s885_s1 + $0x44] ss:$8 sps:$4 sm:$0xff]   ;;  %v634_v12 = vld [vmem:[%s885_s1 + $0x40] ss:$8 sps:$4 sm:$0xff]  }
  0x2a   :  { %v644_v10 = vld [vmem:[#allocation2 + $0x40] sm:$0xff]   ;;  %v646_v13 = vld [vmem:[#allocation2 + $0x48] sm:$0xff]   ;;  %v635_v16 = vld [vmem:[%s885_s1 + $0x54] ss:$8 sps:$4 sm:$0xff]   ;;  %v745_v36 = vmov 0.0   ;;  %v77_v42 = vshrl.u32 %v76_v41, 7 }
  0x2b   :  { %v645_v11 = vld [vmem:[#allocation2] sm:$0xff]   ;;  %561 = vmatprep.subr.bf16.mxu1 %v644_v10  ;;  %v647_v14 = vld [vmem:[#allocation2 + $0x8] sm:$0xff]   ;;  %v637_v17 = vld [vmem:[%s885_s1 + $0x50] ss:$8 sps:$4 sm:$0xff]   ;;  %vm746_vm0 = vmmov 0   ;;  %s747_s14 = smov [#allocation7]  }
  0x2c   :  { %169 = vmatpush1.bf16.msra.mxu0 %v625_v4  ;;  %562 = vmatpush3.bf16.msra.mxu1 %v645_v11  ;;  %v649_v18 = vld [vmem:[#allocation2 + $0x10] sm:$0xff]   ;;  %v650_v19 = vld [vmem:[#allocation2 + $0x58] sm:$0xff]   ;;  %v638_v20 = vld [vmem:[%s885_s1 + $0x64] ss:$8 sps:$4 sm:$0xff]   ;;  %v78_v43 = vsub.s32 0, %v77_v42  ;;  %v82_v45 = vsub.s32 1, %v77_v42 }
  0x2d   :  { %170 = vmatprep.subr.bf16.mxu0 %v626_v5  ;;  %563 = vmatprep.subr.bf16.mxu1 %v646_v13  ;;  %v640_v21 = vld [vmem:[%s885_s1 + $0x60] ss:$8 sps:$4 sm:$0xff]   ;;  %v651_v22 = vld [vmem:[#allocation2 + $0x18] sm:$0xff]   ;;  %v656_v31 = vld [vmem:[#allocation2 + $0x70] sm:$0xff]   ;;  %s509_s15 = sshll.u32 %s747_s14, 4  ;;  %s510_s15 = int_to_ptr.vmem [resolvable:$true] %s509_s15 }
  0x2e   :  { %v641_v23 = vld [vmem:[%s885_s1 + $0x74] ss:$8 sps:$4 sm:$0xff]   ;;  %v652_v24 = vld [vmem:[#allocation2 + $0x60] sm:$0xff]   ;;  %v643_v26 = vld [vmem:[%s885_s1 + $0x70] ss:$8 sps:$4 sm:$0xff]   ;;  %p717_p3 = scmp.lt.s32.totalorder %s510_s15, %s510_s15 }
  0x2f   :  { %v653_v25 = vld [vmem:[#allocation2 + $0x20] sm:$0xff]   ;;  %v654_v28 = vld [vmem:[#allocation2 + $0x68] sm:$0xff]   ;;  %v657_v32 = vld [vmem:[#allocation2 + $0x30] sm:$0xff]  }
  0x30   :  { %171 = vmatpush1.bf16.msra.mxu0 %v628_v6  ;;  %564 = vmatpush3.bf16.msra.mxu1 %v647_v14  ;;  %v56_v27 = vld [vmem:[%s884_s0] sm:$0xff]  ;;  %v655_v30 = vld [vmem:[#allocation2 + $0x28] sm:$0xff]   ;;  %v658_v33 = vld [vmem:[#allocation2 + $0x78] sm:$0xff]  }
  0x31   :  { %172 = vmatprep.subr.bf16.mxu0 %v629_v7  ;;  %565 = vmatprep.subr.bf16.mxu1 %v648_v15  ;;  %v57_v29 = vpack.c.bf16 %v56_v27, %v56_v27  ;;  %v659_v34 = vld [vmem:[#allocation2 + $0x38] sm:$0xff]   ;;  %v660_v35 = vld [vmem:[#allocation5] sm:$0xff]   ;;  %v661_v37 = vld [vmem:[#allocation5 + $0x8] sm:$0xff]  }
  0x32   :  { %v662_v38 = vld [vmem:[#allocation5 + $0x10] sm:$0xff]   ;;  %v663_v39 = vld [vmem:[#allocation5 + $0x18] sm:$0xff]   ;;  %v664_v40 = vld [vmem:[#allocation5 + $0x20] sm:$0xff]  }
  0x33   :  { %v74_v44 = vld [vmem:[%s886_s2] sm:$0x3]  ;;  %v665_v60 = vld [vmem:[#allocation5 + $0x28] sm:$0xff]   ;;  %v666_v61 = vld [vmem:[#allocation5 + $0x30] sm:$0xff]  }
  0x34   :  { %173 = vmatpush1.bf16.msra.mxu0 %v631_v8  ;;  %566 = vmatpush3.bf16.msra.mxu1 %v649_v18  ;;  %v79_v46 = vrot.slane %v74_v44, %v78_v43  ;;  %v83_v47 = vrot.slane %v74_v44, %v82_v45  ;;  %v667_v62 = vld [vmem:[#allocation5 + $0x38] sm:$0xff]   ;;  %v535_v0 = vld [vmem:[%s888_s4] ss:$0 sm:$0xff]  ;;  %s712_s4 = scalar_lea.vmem %s510_s15, 128 }
  0x35   :  { %174 = vmatprep.subr.bf16.mxu0 %v632_v9  ;;  %567 = vmatprep.subr.bf16.mxu1 %v650_v19  ;;  %v552_v9 = vld [vmem:[%s890_s6] ss:$0 sm:$0xff]  ;;  %p713_p2 = scmp.ne.s32.totalorder %s510_s15, %s712_s4  ;;  %p718_p4 = scmp.lt.s32.totalorder %s712_s4, %s712_s4 }
  0x37   :  { %p719_p5 = por %p718_p4, %p717_p3 }
  0x38   :  { %175 = vmatpush1.bf16.msra.mxu0 %v634_v12  ;;  %568 = vmatpush3.bf16.msra.mxu1 %v651_v22 }
  0x39   :  { %176 = vmatprep.subr.bf16.mxu0 %v635_v16  ;;  %569 = vmatprep.subr.bf16.mxu1 %v652_v24  ;;  %p720_p6 = pnand %p719_p5, %p713_p2 }
  0x3c   :  { %177 = vmatpush1.bf16.msra.mxu0 %v637_v17  ;;  %570 = vmatpush3.bf16.msra.mxu1 %v653_v25 }
  0x3d   :  { %178 = vmatprep.subr.bf16.mxu0 %v638_v20  ;;  %571 = vmatprep.subr.bf16.mxu1 %v654_v28 }
  0x40   :  { %179 = vmatpush1.bf16.msra.mxu0 %v640_v21  ;;  %572 = vmatpush3.bf16.msra.mxu1 %v655_v30 }
  0x41   :  { %180 = vmatprep.subr.bf16.mxu0 %v641_v23  ;;  %573 = vmatprep.subr.bf16.mxu1 %v656_v31 }
  0x44   :  { %181 = vmatpush1.bf16.msra.mxu0 %v643_v26  ;;  %574 = vmatpush3.bf16.msra.mxu1 %v657_v32 }
  0x45   :  { %575 = vmatprep.subr.bf16.mxu1 %v658_v33  ;;  %592 = vmatprep.subr.bf16.mxu0 %v745_v36 }
  0x47   :  { %199 = vmatmul.mubr.bf16.vlgmr.msra.gmra.mrb[0].mxu0 %v57_v29 }
  0x48   :  { %576 = vmatpush3.bf16.msra.mxu1 %v659_v34  ;;  %593 = vmatpush3.bf16.msra.mxu0 %v660_v35 }
  0x49   :  { %594 = vmatprep.subr.bf16.mxu0 %v745_v36  ;;  %608 = vmatprep.mubr.msk.bf16.mxu0 %vm746_vm0, %v745_v36 }
  0x4c   :  { %595 = vmatpush3.bf16.msra.mxu0 %v661_v37 }
  0x4d   :  { %596 = vmatprep.subr.bf16.mxu0 %v745_v36 }
  0x50   :  { %597 = vmatpush3.bf16.msra.mxu0 %v662_v38 }
  0x51   :  { %598 = vmatprep.subr.bf16.mxu0 %v745_v36 }
  0x54   :  { %599 = vmatpush3.bf16.msra.mxu0 %v663_v39 }
  0x55   :  { %600 = vmatprep.subr.bf16.mxu0 %v745_v36 }
  0x58   :  { %601 = vmatpush3.bf16.msra.mxu0 %v664_v40 }
  0x59   :  { %602 = vmatprep.subr.bf16.mxu0 %v745_v36 }
  0x5c   :  { %603 = vmatpush3.bf16.msra.mxu0 %v665_v60 }
  0x5d   :  { %604 = vmatprep.subr.bf16.mxu0 %v745_v36 }
  0x60   :  { %605 = vmatpush3.bf16.msra.mxu0 %v666_v61 }
  0x61   :  { %606 = vmatprep.subr.bf16.mxu0 %v745_v36 }
  0x64   :  { %607 = vmatpush3.bf16.msra.mxu0 %v667_v62 }
 0x11a   :  { %v200_v48 = vpop.f32.mrb[0].mxu0 }
 0x11b   :  { %v201_v49 = vadd.f32 %v200_v48, %v79_v46  ;;  %v202_v50 = vpop.f32.mrb[1].mxu0 }
 0x11c   :  { %v203_v51 = vadd.f32 %v202_v50, %v83_v47  ;;  %v204_v52 = vpop.f32.mrb[2].mxu0 }
 0x11d   :  { %v207_v53 = vmul.f32 0.01, %v201_v49  ;;  %v205_v54 = vpop.f32.mrb[3].mxu0 }
 0x11e   :  { %v208_v55 = vmul.f32 0.01, %v203_v51 }
 0x11f   :  { %v209_v56 = vmax.f32 %v201_v49, %v207_v53 }
 0x120   :  { %v210_v57 = vmax.f32 %v203_v51, %v208_v55 }
 0x121   :  { %v211_v59 = vpack.c.bf16 %v209_v56, %v209_v56 }
 0x122   :  { %v212_v58 = vpack.c.bf16 %v210_v57, %v210_v57 }
 0x124   :  { %380 = vmatprep.mubr.bf16.mxu1 %v212_v58 }
 0x125   :  { %381 = vmatmul.mubr.bf16.vlgmr.msra.gmra.mrb[0].mxu1 %v211_v59 }
 0x1f8   :  { %v577_v63 = vpop.f32.mrb[0].mxu1 }
 0x1f9   :  { %v578_v1 = vpop.f32.mrb[1].mxu1 }
 0x1fa   :  { %v579_v2 = vadd.f32 %v578_v1, %v577_v63  ;;  %v580_v3 = vpop.f32.mrb[2].mxu1 }
 0x1fb   :  { %v581_v4 = vpop.f32.mrb[3].mxu1 }
 0x1fc   :  { %v383_v5 = vadd.f32 %v579_v2, %v535_v0 }
 0x1fe   :  { %v388_v6 = vmul.f32 0.01, %v383_v5 }
 0x200   :  { %v389_v7 = vmax.f32 %v383_v5, %v388_v6 }
 0x202   :  { %v390_v8 = vpack.c.bf16 %v389_v7, %v389_v7 }
 0x204   :  { %609 = vmatmul.mubr.bf16.vlgmr.msra.gmra.mrb[4].mxu0 %v390_v8 }
 0x2d7   :  { %v496_v10 = vpop.f32.mrb[4].mxu0 }
 0x2d8   :  { %v497_v11 = vadd.f32 %v552_v9, %v496_v10  ;;  %v610_v12 = vpop.f32.mrb[5].mxu0 }
 0x2d9   :  { %v499_v13 = vpop.f32.mrb[6].mxu0 }
 0x2da   :  { %502 = vst [vmem:[#allocation7] sm:$0xff] %v497_v11  ;;  %v611_v14 = vpop.f32.mrb[7].mxu0 }
 0x2db   :  { %723 = shalt.err (!%p720_p6)
}
 0x2dc   :  { %s724_s6 = scalar_lea.hbm %s891_s7, 128 }
 0x2dd   :  { %p725_p7 = scmp.ne.s32.totalorder %s891_s7, %s724_s6  ;;  %p728_p8 = scmp.lt.u32.totalorder %s724_s6, %s891_s7 }
 0x2df   :  { %p730_p9 = pnand %p728_p8, %p725_p7 }
 0x2e1   :  { %733 = shalt.err (!%p730_p9)
}
 0x2e2   :  { %512 = dma.vmem_to_hbm [thread:$0]  %s510_s15, 128, %s891_s7, [#allocation4]  }
 0x2e3   :  { %738 = dma.done.wait [#allocation4], 128  }
 0x2e4   :  { %739 = vsyncadd [#allocation4], 4294967168 }
 0x2e5   :  { %516 = vsyncpa [#allocation3], 1 }
 0x2e6   :  { %517 = vsyncpa [#allocation6], 1 }
 0x2e7   :  { %518 = vsyncpa [#allocation4], 1 }

</bundles_post_ra>
